<compile_context>
chip_gen: v7x
topology: tpu7x:2x2x1
jax: 0.10.0
libtpu: 0.0.40
codegen_flags: <defaults>
</compile_context>

<pallas_src>
import jax
import jax.numpy as jnp
from jax.experimental import pallas as pl
from jax.experimental.pallas import tpu as pltpu

_LANES = 128


def _mish_kernel(x_ref, o_ref):
    xf = x_ref[...].astype(jnp.float32)
    # tanh(log(1 + e^x)) = ((1+e^x)^2 - 1) / ((1+e^x)^2 + 1) = 1 - 2/d
    ex = jnp.exp(xf)
    d = (1.0 + ex) * (1.0 + ex) + 1.0
    # NOTE: exact divide kept; kernel is HBM-bound on v5e/v6e and the divide
    # is free filler there.  If a v7x bundle dump shows the EUP slot binding,
    # switch to `1.0 - 2.0 * pl.reciprocal(d, approx=True)` (check tolerance).
    o_ref[...] = (xf * (1.0 - 2.0 / d)).astype(o_ref.dtype)


def _mish_ref(x):
    xf = x.astype(jnp.float32)
    return (xf * jnp.tanh(jax.nn.softplus(xf))).astype(x.dtype)


def _choose_tile_rows(rows, pack, max_rows):
    """Row tile: multiple of `pack`, <= max_rows, preferring an even grid."""
    rows_p = pl.cdiv(rows, pack)          # rows measured in sublane packs
    max_p = max(1, max_rows // pack)
    if rows_p <= max_p:
        return rows_p * pack              # whole slab fits in one block
    n_blocks = pl.cdiv(rows_p, max_p)
    if n_blocks % 2:
        n_blocks += 1                     # balance across v7x's 2 TensorCores
    for n_try in (n_blocks, n_blocks + 2, n_blocks + 4):
        tr_p = pl.cdiv(rows_p, n_try)
        if pl.cdiv(rows_p, tr_p) % 2 == 0:
            return tr_p * pack
    return pl.cdiv(rows_p, n_blocks) * pack


def _mish_slab(slab, tile_bytes):
    rows, lanes = slab.shape
    itemsize = slab.dtype.itemsize
    # Sublane pack per dtype: f32 -> 8, bf16 -> 16, int8/fp8 -> 32.
    pack = max(8, 32 // max(1, itemsize))
    max_rows = max(pack, (tile_bytes // (lanes * itemsize)) // pack * pack)
    tr = _choose_tile_rows(rows, pack, max_rows)
    grid = (pl.cdiv(rows, tr),)

    # 1 input + 1 output, each double-buffered -> 4 live blocks; add headroom.
    block_bytes = tr * lanes * itemsize
    vmem_limit = int(min(48 << 20, max(24 << 20, 6 * block_bytes)))

    return pl.pallas_call(
        _mish_kernel,
        out_shape=jax.ShapeDtypeStruct(slab.shape, slab.dtype),
        grid_spec=pltpu.PrefetchScalarGridSpec(
            num_scalar_prefetch=0,
            grid=grid,
            in_specs=[pl.BlockSpec((tr, lanes), lambda i: (i, 0))],
            out_specs=pl.BlockSpec((tr, lanes), lambda i: (i, 0)),
        ),
        compiler_params=pltpu.CompilerParams(
            dimension_semantics=("parallel",),
            vmem_limit_bytes=vmem_limit,
        ),
    )(slab)


def mish(x, *, tile_bytes=4 << 20):
    """Elementwise Mish matching torch: input * tanh(softplus(input))."""
    orig_shape = x.shape
    n = x.size
    if n == 0:
        return x

    flat = x.reshape(-1)
    rem = n % _LANES
    if rem == 0:
        # Common case: zero-copy reshape to a lane-dense slab.
        out = _mish_slab(flat.reshape(n // _LANES, _LANES), tile_bytes)
        return out.reshape(orig_shape)

    # Ragged flat size: kernel over the 128-divisible prefix, tiny jnp tail.
    main_n = n - rem
    if main_n == 0:
        return _mish_ref(x)  # <128 elements total: not worth a kernel launch
    head = _mish_slab(flat[:main_n].reshape(main_n // _LANES, _LANES),
                      tile_bytes)
    tail = _mish_ref(flat[main_n:])
    # TODO(synk): the concatenate is one extra output write pass; could be
    # removed with a masked final block, but this path is rare for activations.
    return jnp.concatenate([head.reshape(-1), tail]).reshape(orig_shape)


if __name__ == "__main__":
    key = jax.random.PRNGKey(0)
    # NCHW-style activation tensor (batch=2, channels=4, spatial=16x16).
    x = jax.random.normal(key, (2, 4, 16, 16), dtype=jnp.float32) * 3.0

    y = mish(x)
    jax.block_until_ready(y)

    y_ref = _mish_ref(x)
    assert y.shape == x.shape and y.dtype == x.dtype
    assert jnp.allclose(y, y_ref, atol=1e-5, rtol=1e-5)
    print("KERNEL_OK")
</pallas_src>

<mosaic_0001>
module attributes {stable_mosaic.version = 11 : i64} {
  func.func @_mish_kernel(%arg0: i32, %arg1: memref<16x128xf32, #tpu.memory_space<vmem>>, %arg2: memref<16x128xf32, #tpu.memory_space<vmem>>) attributes {dimension_semantics = [#tpu.dimension_semantics<parallel>], iteration_bounds = array<i64: 1>, scalar_prefetch = 0 : i64, scratch_operands = 0 : i64, tpu.core_type = #tpu.core_type<tc>, window_params = [{transform_indices = @transform_0, window_bounds = array<i64: 16, 128>}, {transform_indices = @transform_1, window_bounds = array<i64: 16, 128>}]} {
    %c0 = arith.constant 0 : index
    %c0_0 = arith.constant 0 : index
    %0 = vector.load %arg1[%c0, %c0_0] : memref<16x128xf32, #tpu.memory_space<vmem>>, vector<16x128xf32>
    %1 = math.exp %0 : vector<16x128xf32>
    %cst = arith.constant 1.000000e+00 : f32
    %2 = vector.broadcast %cst : f32 to vector<16x128xf32>
    %3 = arith.addf %2, %1 : vector<16x128xf32>
    %cst_1 = arith.constant 1.000000e+00 : f32
    %4 = vector.broadcast %cst_1 : f32 to vector<16x128xf32>
    %5 = arith.addf %4, %1 : vector<16x128xf32>
    %6 = arith.mulf %3, %5 : vector<16x128xf32>
    %cst_2 = arith.constant 1.000000e+00 : f32
    %7 = vector.broadcast %cst_2 : f32 to vector<16x128xf32>
    %8 = arith.addf %6, %7 : vector<16x128xf32>
    %cst_3 = arith.constant 2.000000e+00 : f32
    %9 = vector.broadcast %cst_3 : f32 to vector<16x128xf32>
    %10 = arith.divf %9, %8 : vector<16x128xf32>
    %cst_4 = arith.constant 1.000000e+00 : f32
    %11 = vector.broadcast %cst_4 : f32 to vector<16x128xf32>
    %12 = arith.subf %11, %10 : vector<16x128xf32>
    %13 = arith.mulf %0, %12 : vector<16x128xf32>
    %c0_5 = arith.constant 0 : index
    %c0_6 = arith.constant 0 : index
    %14 = vector.load %arg2[%c0_5, %c0_6] : memref<16x128xf32, #tpu.memory_space<vmem>>, vector<16x128xf32>
    tpu.vector_store %arg2[%c0_5, %c0_6], %13 {strides = array<i32>} : memref<16x128xf32, #tpu.memory_space<vmem>>, vector<16x128xf32>,
    return
  }
  func.func @transform_0(%arg0: i32) -> (i32, i32) {
    %c0_i32 = arith.constant 0 : i32
    %c0_i32_0 = arith.constant 0 : i32
    return %arg0, %c0_i32 : i32, i32
  }
  func.func @transform_1(%arg0: i32) -> (i32, i32) {
    %c0_i32 = arith.constant 0 : i32
    %c0_i32_0 = arith.constant 0 : i32
    return %arg0, %c0_i32 : i32, i32
  }
}

</mosaic_0001>

<bundles_post_ra>
// kernel: tpu_custom_call.1
= control target key start
LH: loop header
LB: loop body
LE: loop exit
PB: predicated region body
PF: predicated region fallthrough
CT: control target
= control target key end

     0   :  { %6 = vsyncpa [#allocation3], 0  ;;  %s166_s0 = inlined_call_operand.hbm [shape: f32[16,128], index: 0, kind: input, shape index: {}]   ;;  %s167_s1 = inlined_call_operand.hbm [shape: f32[16,128], index: 1, kind: output, shape index: {}]  }
   0x1   :  { %7 = vsyncpa [#allocation4], 0  ;;  %s122_s6 = smov [#allocation2]   ;;  %s74_s10 = scalar_lea.hbm %s166_s0, 256 }
   0x2   :  { %s13_s7 = sshll.u32 %s122_s6, 4  ;;  %p75_p0 = scmp.ne.s32.totalorder %s166_s0, %s74_s10  ;;  %s14_s7 = int_to_ptr.vmem [resolvable:$true] %s13_s7 }
   0x3   :  { %p78_p1 = scmp.lt.u32.totalorder %s74_s10, %s166_s0 }
   0x5   :  { %p80_p2 = pnand %p78_p1, %p75_p0 }
   0x7   :  { %83 = shalt.err (!%p80_p2)
}
   0x8   :  { %s84_s15 = scalar_lea.vmem %s14_s7, 256  ;;  %p89_p4 = scmp.lt.s32.totalorder %s14_s7, %s14_s7 }
   0x9   :  { %p85_p3 = scmp.ne.s32.totalorder %s14_s7, %s84_s15  ;;  %p90_p5 = scmp.lt.s32.totalorder %s84_s15, %s84_s15 }
   0xb   :  { %p91_p6 = por %p90_p5, %p89_p4 }
   0xd   :  { %p92_p7 = pnand %p91_p6, %p85_p3 }
   0xf   :  { %95 = shalt.err (!%p92_p7)
}
  0x10   :  { %s123_s16 = smov 128   ;;  %s124_s17 = smov 8  }
  0x11   :  { %19 = dma.hbm_to_vmem [thread:$0]  %s166_s0, 256, %s14_s7, [#allocation3], %s123_s16, %s123_s16, %s124_s17  }
  0x12   :  { %118 = dma.done.wait [#allocation3], 256  }
  0x13   :  { %119 = vsyncadd [#allocation3], 4294967040  ;;  %v23_v0 = vld [vmem:[#allocation2] sm:$0xff]  ;;  %v24_v1 = vld [vmem:[#allocation2 + $0x8] sm:$0xff]  ;;  %s125_s0 = smov [#allocation5]  }
  0x14   :  { %v25_v2 = vmul.f32 1.442695, %v23_v0  ;;  %v27_v3 = vmul.f32 1.442695, %v24_v1  ;;  %s50_s20 = sshll.u32 %s125_s0, 4  ;;  %s51_s20 = int_to_ptr.vmem [resolvable:$true] %s50_s20 }
  0x15   :  { %s96_s21 = scalar_lea.vmem %s51_s20, 256  ;;  %p101_p9 = scmp.lt.s32.totalorder %s51_s20, %s51_s20 }
  0x16   :  { %66 = vpow2.f32 %v25_v2  ;;  %p97_p8 = scmp.ne.s32.totalorder %s51_s20, %s96_s21  ;;  %p102_p10 = scmp.lt.s32.totalorder %s96_s21, %s96_s21 }
  0x17   :  { %68 = vpow2.f32 %v27_v3 }
  0x18   :  { %p103_p11 = por %p102_p10, %p101_p9 }
  0x1a   :  { %p104_p12 = pnand %p103_p11, %p97_p8 }
  0x20   :  { %v67_v4 = vpop.eup %66 }
  0x21   :  { %v69_v5 = vpop.eup %68  ;;  %v29_v6 = vadd.f32 1.0, %v67_v4 }
  0x22   :  { %v30_v7 = vadd.f32 1.0, %v69_v5 }
  0x23   :  { %v31_v8 = vmul.f32 %v29_v6, %v29_v6 }
  0x24   :  { %v32_v9 = vmul.f32 %v30_v7, %v30_v7 }
  0x25   :  { %v33_v10 = vadd.f32 1.0, %v31_v8 }
  0x26   :  { %v34_v11 = vadd.f32 1.0, %v32_v9 }
  0x27   :  { %70 = vrcp.f32 %v33_v10 }
  0x28   :  { %72 = vrcp.f32 %v34_v11 }
  0x31   :  { %v71_v12 = vpop.eup %70 }
  0x32   :  { %v73_v13 = vpop.eup %72  ;;  %v36_v14 = vmul.f32 2.0, %v71_v12 }
  0x33   :  { %v38_v15 = vmul.f32 2.0, %v73_v13 }
  0x34   :  { %v39_v16 = vsub.f32 1.0, %v36_v14 }
  0x35   :  { %v40_v17 = vsub.f32 1.0, %v38_v15 }
  0x36   :  { %v41_v18 = vmul.f32 %v39_v16, %v23_v0 }
  0x37   :  { %v42_v19 = vmul.f32 %v40_v17, %v24_v1 }
  0x38   :  { %43 = vst [vmem:[#allocation5] sm:$0xff] %v41_v18 }
  0x39   :  { %44 = vst [vmem:[#allocation5 + $0x8] sm:$0xff] %v42_v19 }
  0x3a   :  { %107 = shalt.err (!%p104_p12)
}
  0x3b   :  { %s108_s24 = scalar_lea.hbm %s167_s1, 256 }
  0x3c   :  { %p109_p13 = scmp.ne.s32.totalorder %s167_s1, %s108_s24  ;;  %p112_p0 = scmp.lt.u32.totalorder %s108_s24, %s167_s1 }
  0x3e   :  { %p114_p1 = pnand %p112_p0, %p109_p13 }
  0x40   :  { %117 = shalt.err (!%p114_p1)
}
  0x41   :  { %56 = dma.vmem_to_hbm [thread:$0]  %s51_s20, 256, %s167_s1, [#allocation4], %s123_s16, %s123_s16, %s124_s17  }
  0x42   :  { %120 = dma.done.wait [#allocation4], 256  }
  0x43   :  { %121 = vsyncadd [#allocation4], 4294967040 }
  0x44   :  { %60 = vsyncpa [#allocation3], 1 }
  0x45   :  { %61 = vsyncpa [#allocation4], 1 }

</bundles_post_ra>
